<compile_context>
chip_gen: v7x
topology: tpu7x:2x2x1
jax: 0.10.0
libtpu: 0.0.40
codegen_flags: <defaults>
</compile_context>

<pallas_src>
import functools

import jax
import jax.numpy as jnp
from jax.experimental import pallas as pl
from jax.experimental.pallas import tpu as pltpu


def _round_up(x, m):
    return ((x + m - 1) // m) * m


def mnist_dnn_kernel(x_ref, w1_ref, b1_ref, w2_ref, b2_ref, o_ref):
    # x_ref:  (TB, D_in) bf16     w1_ref: (D_in, H) bf16   b1_ref: (1, H) f32
    # w2_ref: (H, O_pad) f32      b2_ref: (1, O_pad) f32   o_ref:  (TB, O_pad) f32
    x = x_ref[...]

    # input_layer + ReLU (bf16 MXU matmul, f32 accumulate)
    h = jnp.dot(x, w1_ref[...], preferred_element_type=jnp.float32) + b1_ref[...]
    h = jnp.maximum(h, 0.0)

    # hidden_layer (tiny f32 matmul; padded class columns get bias -1e30)
    logits = jnp.dot(h, w2_ref[...], preferred_element_type=jnp.float32) + b2_ref[...]

    # numerically stable softmax over the (padded) class axis; padded classes
    # contribute exp(-1e30 - m) == 0 so the result equals softmax over the
    # real classes.
    m = jnp.max(logits, axis=-1, keepdims=True)
    e = jnp.exp(logits - m)
    denom = jnp.sum(e, axis=-1, keepdims=True)
    o_ref[...] = (e * pl.reciprocal(denom)).astype(o_ref.dtype)


def prepare_params(w1, b1, w2, b2):
    """One-time parameter prep (hoisted out of the per-call forward path).

    PyTorch Linear weights are (out, in); transpose to (in, out), pad the
    class dimension to 128 lanes and cast the streamed weight to bf16.
    """
    hidden, d_in = w1.shape
    out_sz = w2.shape[0]
    o_pad = _round_up(out_sz, 128)

    w1_t = w1.T.astype(jnp.bfloat16)                               # (d_in, hidden)
    b1_2d = b1.reshape(1, hidden).astype(jnp.float32)              # (1, hidden)

    w2_t = jnp.zeros((hidden, o_pad), jnp.float32)
    w2_t = w2_t.at[:, :out_sz].set(w2.T.astype(jnp.float32))       # (hidden, o_pad)
    b2_2d = jnp.full((1, o_pad), -1e30, jnp.float32)
    b2_2d = b2_2d.at[0, :out_sz].set(b2.astype(jnp.float32))       # (1, o_pad)

    return dict(w1_t=w1_t, b1=b1_2d, w2_t=w2_t, b2=b2_2d,
                d_in=d_in, hidden=hidden, out_sz=out_sz, o_pad=o_pad)


@functools.partial(jax.jit, static_argnames=("tile_b",))
def _forward_prepared(x, w1_t, b1_2d, w2_t, b2_2d, *, tile_b):
    B = x.shape[0]
    x2d = x.reshape(B, -1).astype(jnp.bfloat16)        # flatten, == xb.view(B, -1)
    d_in = x2d.shape[1]
    hidden = w1_t.shape[1]
    o_pad = w2_t.shape[1]

    # Batch tile: multiple of 16 (bf16 sublane packing); cap at tile_b.
    tb = min(tile_b, _round_up(B, 16))
    b_pad = _round_up(B, tb)
    if b_pad != B:
        x2d = jnp.pad(x2d, ((0, b_pad - B), (0, 0)))

    out = pl.pallas_call(
        mnist_dnn_kernel,
        out_shape=jax.ShapeDtypeStruct((b_pad, o_pad), jnp.float32),
        grid=(b_pad // tb,),
        in_specs=[
            pl.BlockSpec((tb, d_in), lambda i: (i, 0)),        # x: streamed
            pl.BlockSpec((d_in, hidden), lambda i: (0, 0)),    # W1: resident
            pl.BlockSpec((1, hidden), lambda i: (0, 0)),       # b1: resident
            pl.BlockSpec((hidden, o_pad), lambda i: (0, 0)),   # W2: resident
            pl.BlockSpec((1, o_pad), lambda i: (0, 0)),        # b2: resident
        ],
        out_specs=pl.BlockSpec((tb, o_pad), lambda i: (i, 0)),
        compiler_params=pltpu.CompilerParams(
            dimension_semantics=("parallel",),                 # v7x: shard over 2 TCs
            vmem_limit_bytes=32 * 1024 * 1024,                 # above v5e 16 MiB default,
        ),                                                     # well under v7x 64 MiB
    )(x2d, w1_t, b1_2d, w2_t, b2_2d)

    return out[:B, :]


def mnist_dnn_forward(x, params, *, tile_b=512):
    """x: (B, C, H, W) float32.  Returns (B, output_size) softmax probabilities."""
    out = _forward_prepared(x, params["w1_t"], params["b1"],
                            params["w2_t"], params["b2"], tile_b=tile_b)
    return out[:, :params["out_sz"]]


def init_linear(key, out_features, in_features):
    # Deterministic PyTorch-style init: U(-1/sqrt(fan_in), 1/sqrt(fan_in))
    kw, kb = jax.random.split(key)
    bound = 1.0 / jnp.sqrt(jnp.float32(in_features))
    w = jax.random.uniform(kw, (out_features, in_features), jnp.float32, -bound, bound)
    b = jax.random.uniform(kb, (out_features,), jnp.float32, -bound, bound)
    return w, b


if __name__ == "__main__":
    # Small MNIST-like shapes: batch=2, 1 channel, 16x16 image -> input_size=256
    batch, chan, hw = 2, 1, 16
    input_size = chan * hw * hw   # 256
    hidden_size = 32
    output_size = 10

    key = jax.random.PRNGKey(0)
    kx, k1, k2 = jax.random.split(key, 3)

    x = jax.random.normal(kx, (batch, chan, hw, hw), jnp.float32)
    w1, b1 = init_linear(k1, hidden_size, input_size)
    w2, b2 = init_linear(k2, output_size, hidden_size)

    params = prepare_params(w1, b1, w2, b2)   # one-time: transpose/pad/cast

    out = mnist_dnn_forward(x, params)
    out = jax.block_until_ready(out)

    # Reference check in plain f32 JAX (same math). Tolerance loosened slightly
    # because x / W1 are streamed in bf16 (f32 accumulation).
    x2d = x.reshape(batch, -1)
    h_ref = jnp.maximum(x2d @ w1.T + b1, 0.0)
    logits_ref = h_ref @ w2.T + b2
    ref = jax.nn.softmax(logits_ref, axis=1)

    assert out.shape == (batch, output_size)
    assert jnp.allclose(out, ref, atol=1e-2, rtol=1e-2)
    assert jnp.allclose(jnp.sum(out, axis=1), 1.0, atol=1e-5)
    assert jnp.array_equal(jnp.argmax(out, axis=1), jnp.argmax(ref, axis=1))

    print("KERNEL_OK")
</pallas_src>

<mosaic_0001>
module attributes {stable_mosaic.version = 11 : i64} {
  func.func @mnist_dnn_kernel(%arg0: i32, %arg1: memref<16x256xbf16, #tpu.memory_space<vmem>>, %arg2: memref<256x32xbf16, #tpu.memory_space<vmem>>, %arg3: memref<1x32xf32, #tpu.memory_space<vmem>>, %arg4: memref<32x128xf32, #tpu.memory_space<vmem>>, %arg5: memref<1x128xf32, #tpu.memory_space<vmem>>, %arg6: memref<16x128xf32, #tpu.memory_space<vmem>>) attributes {dimension_semantics = [#tpu.dimension_semantics<parallel>], iteration_bounds = array<i64: 1>, scalar_prefetch = 0 : i64, scratch_operands = 0 : i64, tpu.core_type = #tpu.core_type<tc>, window_params = [{transform_indices = @transform_0, window_bounds = array<i64: 16, 256>}, {pipeline_mode = #tpu.pipeline_mode<synchronous>, transform_indices = @transform_1, window_bounds = array<i64: 256, 32>}, {pipeline_mode = #tpu.pipeline_mode<synchronous>, transform_indices = @transform_2, window_bounds = array<i64: 1, 32>}, {pipeline_mode = #tpu.pipeline_mode<synchronous>, transform_indices = @transform_3, window_bounds = array<i64: 32, 128>}, {pipeline_mode = #tpu.pipeline_mode<synchronous>, transform_indices = @transform_4, window_bounds = array<i64: 1, 128>}, {transform_indices = @transform_5, window_bounds = array<i64: 16, 128>}]} {
    %c0 = arith.constant 0 : index
    %c0_0 = arith.constant 0 : index
    %0 = vector.load %arg1[%c0, %c0_0] : memref<16x256xbf16, #tpu.memory_space<vmem>>, vector<16x256xbf16>
    %c0_1 = arith.constant 0 : index
    %c0_2 = arith.constant 0 : index
    %1 = vector.load %arg2[%c0_1, %c0_2] : memref<256x32xbf16, #tpu.memory_space<vmem>>, vector<256x32xbf16>
    %cst = arith.constant dense<0.000000e+00> : vector<16x32xf32>
    %2 = tpu.matmul %0, %1, %cst {dimension_numbers = #tpu.dot_dimension_numbers<[1], [0], [0], [1], [0, 0, 1, 1], [], []>} : vector<16x256xbf16>, vector<256x32xbf16>, vector<16x32xf32> -> vector<16x32xf32>
    %c0_3 = arith.constant 0 : index
    %c0_4 = arith.constant 0 : index
    %3 = vector.load %arg3[%c0_3, %c0_4] : memref<1x32xf32, #tpu.memory_space<vmem>>, vector<1x32xf32>
    %4 = vector.broadcast %3 : vector<1x32xf32> to vector<16x32xf32>
    %5 = arith.addf %2, %4 : vector<16x32xf32>
    %cst_5 = arith.constant 0.000000e+00 : f32
    %6 = vector.broadcast %cst_5 : f32 to vector<16x32xf32>
    %7 = arith.maximumf %5, %6 : vector<16x32xf32>
    %c0_6 = arith.constant 0 : index
    %c0_7 = arith.constant 0 : index
    %8 = vector.load %arg4[%c0_6, %c0_7] : memref<32x128xf32, #tpu.memory_space<vmem>>, vector<32x128xf32>
    %cst_8 = arith.constant dense<0.000000e+00> : vector<16x128xf32>
    %9 = tpu.matmul %7, %8, %cst_8 {dimension_numbers = #tpu.dot_dimension_numbers<[1], [0], [0], [1], [0, 0, 1, 1], [], []>} : vector<16x32xf32>, vector<32x128xf32>, vector<16x128xf32> -> vector<16x128xf32>
    %c0_9 = arith.constant 0 : index
    %c0_10 = arith.constant 0 : index
    %10 = vector.load %arg5[%c0_9, %c0_10] : memref<1x128xf32, #tpu.memory_space<vmem>>, vector<1x128xf32>
    %11 = vector.broadcast %10 : vector<1x128xf32> to vector<16x128xf32>
    %12 = arith.addf %9, %11 : vector<16x128xf32>
    %cst_11 = arith.constant dense<0xFF800000> : vector<16xf32>
    %13 = vector.multi_reduction <maximumf>, %12, %cst_11 [1] : vector<16x128xf32> to vector<16xf32>
    %14 = vector.shape_cast %13 : vector<16xf32> to vector<16x1xf32>
    %15 = vector.broadcast %14 : vector<16x1xf32> to vector<16x128xf32>
    %16 = arith.subf %12, %15 : vector<16x128xf32>
    %17 = math.exp %16 : vector<16x128xf32>
    %cst_12 = arith.constant dense<0.000000e+00> : vector<16xf32>
    %18 = vector.multi_reduction <add>, %17, %cst_12 [1] : vector<16x128xf32> to vector<16xf32>
    %19 = vector.shape_cast %18 : vector<16xf32> to vector<16x1xf32>
    %20 = tpu.reciprocal %19 : vector<16x1xf32> -> vector<16x1xf32>
    %21 = vector.broadcast %20 : vector<16x1xf32> to vector<16x128xf32>
    %22 = arith.mulf %17, %21 : vector<16x128xf32>
    %c0_13 = arith.constant 0 : index
    %c0_14 = arith.constant 0 : index
    %23 = vector.load %arg6[%c0_13, %c0_14] : memref<16x128xf32, #tpu.memory_space<vmem>>, vector<16x128xf32>
    tpu.vector_store %arg6[%c0_13, %c0_14], %22 {strides = array<i32>} : memref<16x128xf32, #tpu.memory_space<vmem>>, vector<16x128xf32>,
    return
  }
  func.func @transform_0(%arg0: i32) -> (i32, i32) {
    %c0_i32 = arith.constant 0 : i32
    %c0_i32_0 = arith.constant 0 : i32
    return %arg0, %c0_i32 : i32, i32
  }
  func.func @transform_1(%arg0: i32) -> (i32, i32) {
    %c0_i32 = arith.constant 0 : i32
    %c0_i32_0 = arith.constant 0 : i32
    %c0_i32_1 = arith.constant 0 : i32
    return %c0_i32, %c0_i32_0 : i32, i32
  }
  func.func @transform_2(%arg0: i32) -> (i32, i32) {
    %c0_i32 = arith.constant 0 : i32
    %c0_i32_0 = arith.constant 0 : i32
    %c0_i32_1 = arith.constant 0 : i32
    return %c0_i32, %c0_i32_0 : i32, i32
  }
  func.func @transform_3(%arg0: i32) -> (i32, i32) {
    %c0_i32 = arith.constant 0 : i32
    %c0_i32_0 = arith.constant 0 : i32
    %c0_i32_1 = arith.constant 0 : i32
    return %c0_i32, %c0_i32_0 : i32, i32
  }
  func.func @transform_4(%arg0: i32) -> (i32, i32) {
    %c0_i32 = arith.constant 0 : i32
    %c0_i32_0 = arith.constant 0 : i32
    %c0_i32_1 = arith.constant 0 : i32
    return %c0_i32, %c0_i32_0 : i32, i32
  }
  func.func @transform_5(%arg0: i32) -> (i32, i32) {
    %c0_i32 = arith.constant 0 : i32
    %c0_i32_0 = arith.constant 0 : i32
    return %arg0, %c0_i32 : i32, i32
  }
}

</mosaic_0001>

<bundles_post_ra>
// kernel: _forward_prepared.1
= control target key start
LH: loop header
LB: loop body
LE: loop exit
PB: predicated region body
PF: predicated region fallthrough
CT: control target
= control target key end

     0   :  { %vm222_vm0 = vcmask 261120   ;;  %s532_s1 = inlined_call_operand.vmem [shape: bf16[256,32], index: 1, kind: input, shape index: {}]   ;;  %s533_s0 = inlined_call_operand.vmem [shape: bf16[16,256], index: 0, kind: input, shape index: {}]   ;;  %s534_s3 = inlined_call_operand.vmem [shape: f32[32,128], index: 3, kind: input, shape index: {}]   ;;  %s535_s2 = inlined_call_operand.vmem [shape: f32[1,32], index: 2, kind: input, shape index: {}]   ;;  %s536_s4 = inlined_call_operand.vmem [shape: f32[1,128], index: 4, kind: input, shape index: {}]   ;;  %s537_s5 = inlined_call_operand.vmem [shape: f32[16,128], index: 5, kind: output, shape index: {}]  }
   0x1   :  { %v397_v0 = vld [vmem:[%s532_s1 + $0x40] sm:$0xff]   ;;  %v399_v2 = vld [vmem:[%s532_s1 + $0x48] sm:$0xff]   ;;  %v401_v4 = vld [vmem:[%s532_s1 + $0x50] sm:$0xff]  }
   0x2   :  { %v398_v1 = vld [vmem:[%s532_s1] sm:$0xff]   ;;  %350 = vmatprep.subr.bf16.mxu0 %v397_v0  ;;  %v400_v3 = vld [vmem:[%s532_s1 + $0x8] sm:$0xff]   ;;  %v402_v5 = vld [vmem:[%s532_s1 + $0x10] sm:$0xff]  }
   0x3   :  { %351 = vmatpush3.bf16.msra.mxu0 %v398_v1  ;;  %v403_v6 = vld [vmem:[%s532_s1 + $0x58] sm:$0xff]   ;;  %v405_v8 = vld [vmem:[%s532_s1 + $0x60] sm:$0xff]   ;;  %v407_v10 = vld [vmem:[%s532_s1 + $0x68] sm:$0xff]  }
   0x4   :  { %352 = vmatprep.subr.bf16.mxu0 %v399_v2  ;;  %v404_v7 = vld [vmem:[%s532_s1 + $0x18] sm:$0xff]   ;;  %v406_v9 = vld [vmem:[%s532_s1 + $0x20] sm:$0xff]   ;;  %v408_v12 = vld [vmem:[%s532_s1 + $0x28] sm:$0xff]  }
   0x5   :  { %v415_v11 = vld [vmem:[%s533_s0 + $0x4] ss:$8 sps:$4 sm:$0xff]   ;;  %v409_v13 = vld [vmem:[%s532_s1 + $0x70] sm:$0xff]   ;;  %v411_v15 = vld [vmem:[%s532_s1 + $0x78] sm:$0xff]  }
   0x6   :  { %200 = vmatprep.mubr.bf16.mxu0 %v415_v11  ;;  %v410_v14 = vld [vmem:[%s532_s1 + $0x30] sm:$0xff]   ;;  %v412_v16 = vld [vmem:[%s532_s1 + $0x38] sm:$0xff]   ;;  %v413_v17 = vld [vmem:[%s533_s0] ss:$8 sps:$4 sm:$0xff]  }
   0x7   :  { %353 = vmatpush3.bf16.msra.mxu0 %v400_v3  ;;  %v211_v18 = vld [vmem:[%s534_s3] sm:$0xff]  ;;  %v212_v19 = vld [vmem:[%s534_s3 + $0x8] sm:$0xff]  ;;  %v213_v21 = vld [vmem:[%s534_s3 + $0x10] sm:$0xff] }
   0x8   :  { %354 = vmatprep.subr.bf16.mxu0 %v401_v4  ;;  %v389_v20 = vpack.c.bf16 %v212_v19, %v211_v18  ;;  %v214_v22 = vld [vmem:[%s534_s3 + $0x18] sm:$0xff]  ;;  %v328_v26 = vld [vmem:[%s535_s2] ss:$0 sm:$0xff] }
   0x9   :  { %v393_v23 = vpack.c.bf16 %v214_v22, %v213_v21  ;;  %v347_v35 = vld [vmem:[%s536_s4] ss:$0 sm:$0xff] }
   0xa   :  { %390 = vmatprep.subr.bf16.mxu1 %v389_v20 }
   0xb   :  { %355 = vmatpush3.bf16.msra.mxu0 %v402_v5  ;;  %392 = vmatpush3.bf16.msra.mxu1 %v389_v20 }
   0xc   :  { %356 = vmatprep.subr.bf16.mxu0 %v403_v6  ;;  %394 = vmatprep.subr.bf16.mxu1 %v393_v23 }
   0xf   :  { %357 = vmatpush3.bf16.msra.mxu0 %v404_v7  ;;  %396 = vmatpush3.bf16.msra.mxu1 %v393_v23 }
  0x10   :  { %358 = vmatprep.subr.bf16.mxu0 %v405_v8 }
  0x13   :  { %359 = vmatpush3.bf16.msra.mxu0 %v406_v9 }
  0x14   :  { %360 = vmatprep.subr.bf16.mxu0 %v407_v10 }
  0x17   :  { %361 = vmatpush3.bf16.msra.mxu0 %v408_v12 }
  0x18   :  { %362 = vmatprep.subr.bf16.mxu0 %v409_v13 }
  0x1b   :  { %363 = vmatpush3.bf16.msra.mxu0 %v410_v14 }
  0x1c   :  { %364 = vmatprep.subr.bf16.mxu0 %v411_v15 }
  0x1f   :  { %365 = vmatpush3.bf16.msra.mxu0 %v412_v16 }
  0x22   :  { %201 = vmatmul.mubr.bf16.vlgmr.msra.gmra.mrb[0].mxu0 %v413_v17 }
  0xf5   :  { %v366_v24 = vpop.f32.mrb[0].mxu0 }
  0xf6   :  { %v367_v25 = vpop.f32.mrb[1].mxu0 }
  0xf7   :  { %v368_v27 = vadd.f32 %v367_v25, %v366_v24  ;;  %v369_v28 = vpop.f32.mrb[2].mxu0 }
  0xf8   :  { %v370_v29 = vpop.f32.mrb[3].mxu0 }
  0xf9   :  { %v371_v30 = vadd.f32 %v370_v29, %v369_v28  ;;  %v203_v31 = vadd.f32 %v368_v27, %v328_v26 }
  0xfb   :  { %v206_v32 = vadd.f32 %v371_v30, %v328_v26  ;;  %v209_v33 = vmax.f32 %v203_v31, 0.0 }
  0xfd   :  { %v210_v34 = vmax.f32 %v206_v32, 0.0  ;;  %386 = vmatprep.mubr.msk.f32.mxu1 %vm222_vm0, %v209_v33 }
  0xff   :  { %387 = vmatmul.mubr.msk.f32.vlgmr.msra.gmra.mrb[0].mxu1 %vm222_vm0, %v210_v34 }
 0x1d2   :  { %v388_v36 = vpop.f32.mrb[0].mxu1 }
 0x1d3   :  { %v295_v37 = vpop.f32.mrb[1].mxu1  ;;  %v301_v39 = vadd.f32 %v388_v36, %v347_v35 }
 0x1d4   :  { %v296_v38 = vadd.f32 %v347_v35, %v295_v37 }
 0x1d6   :  { %304 = vmax.xlane.f32.xlu0 %v296_v38 }
 0x1da   :  { %306 = vmax.xlane.f32.xlu0 %v301_v39 }
 0x263   :  { %v305_v40 = vpop.xlane.xlu0 %304 }
 0x264   :  { %v308_v41 = vsub.f32 %v296_v38, %v305_v40 }
 0x266   :  { %v310_v42 = vmul.f32 1.442695, %v308_v41 }
 0x267   :  { %v307_v43 = vpop.xlane.xlu0 %306 }
 0x268   :  { %416 = vpow2.f32 %v310_v42  ;;  %v309_v44 = vsub.f32 %v301_v39, %v307_v43 }
 0x26a   :  { %v312_v45 = vmul.f32 1.442695, %v309_v44 }
 0x26c   :  { %418 = vpow2.f32 %v312_v45 }
 0x272   :  { %v417_v46 = vpop.eup %416 }
 0x273   :  { %314 = vadd.xlane.f32.xlu1 %v417_v46 }
 0x276   :  { %v419_v47 = vpop.eup %418 }
 0x277   :  { %316 = vadd.xlane.f32.xlu1 %v419_v47 }
 0x300   :  { %v315_v48 = vpop.xlane.xlu1 %314 }
 0x301   :  { %420 = vrcp.f32 %v315_v48 }
 0x304   :  { %v317_v49 = vpop.xlane.xlu1 %316 }
 0x305   :  { %422 = vrcp.f32 %v317_v49 }
 0x30b   :  { %v421_v50 = vpop.eup %420 }
 0x30c   :  { %v320_v51 = vmul.f32 %v421_v50, %v417_v46 }
 0x30e   :  { %322 = vst [vmem:[%s537_s5] sm:$0xff] %v320_v51 }
 0x30f   :  { %v423_v52 = vpop.eup %422 }
 0x310   :  { %v321_v53 = vmul.f32 %v423_v52, %v419_v47 }
 0x312   :  { %323 = vst [vmem:[%s537_s5 + $0x8] sm:$0xff] %v321_v53 }

</bundles_post_ra>
